<compile_context>
chip_gen: v6e
topology: v6e:2x2x1
jax: 0.10.0
libtpu: 0.0.40
codegen_flags: <defaults>
</compile_context>

<pallas_src>
import math

import jax
import jax.numpy as jnp
from jax import lax
from jax.experimental import pallas as pl
from jax.experimental.pallas import tpu as pltpu


def _nbytes(shape, dtype):
    return math.prod(shape) * jnp.dtype(dtype).itemsize


# ------------------------------------------------------------------
# Fused kernel: audio Linear+normalize  ||  text gather+mean-pool+normalize
# ------------------------------------------------------------------
def _fused_kernel(x_ref, wt_ref, b_ref, ids_ref, mask_ref, tbl_ref,
                  aout_ref, tout_ref):
    # ---- audio path: y = x @ W^T + b ; out = y / ||y|| ----
    # x, W^T are bf16 (MXU-native); accumulate in f32.
    y = jnp.dot(x_ref[...], wt_ref[...],
                preferred_element_type=jnp.float32) + b_ref[...]
    inv_a = lax.rsqrt(jnp.maximum(jnp.sum(y * y, axis=-1, keepdims=True), 1e-24))
    aout_ref[...] = (y * inv_a).astype(aout_ref.dtype)

    # ---- text path: mask-weighted one-hot accumulation + MXU gather-matmul ----
    ids = ids_ref[...]                                   # (tb, S) int32
    mask = mask_ref[...]                                 # (tb, S) f32
    tb, S = ids.shape
    V = tbl_ref.shape[0]
    vocab_iota = lax.broadcasted_iota(jnp.int32, (tb, V), 1)

    def accum(w, id_col, m_col):
        # weights[b, v] += mask[b, s] * (ids[b, s] == v); duplicates accumulate.
        return w + jnp.where(id_col == vocab_iota, m_col, 0.0)

    w0 = jnp.zeros((tb, V), jnp.float32)
    if S <= 128:
        # Unrolled at trace time; only the (tb, V) accumulator is live (no (tb,S,V)).
        weights = w0
        for s in range(S):
            weights = accum(weights, ids[:, s:s + 1], mask[:, s:s + 1])
    else:
        # Long sequences: bounded-live-range loop over S.
        # TODO(synk): at production vocab sizes replace the whole one-hot path with a
        # scalar-prefetched DMA row gather from an HBM-resident table.
        def body(s, w):
            return accum(w,
                         lax.dynamic_slice_in_dim(ids, s, 1, axis=1),
                         lax.dynamic_slice_in_dim(mask, s, 1, axis=1))
        weights = lax.fori_loop(0, S, body, w0)

    # masked sum of token embeddings via MXU: (tb, V) @ (V, D), bf16 in / f32 acc.
    summed = jnp.dot(weights.astype(tbl_ref.dtype), tbl_ref[...],
                     preferred_element_type=jnp.float32)        # (tb, D)
    # per-row token count == row-sum of weights (avoids a second (tb,S) reduction);
    # approximate reciprocal runs on the EUP and cancels exactly in the normalize.
    cnt = jnp.sum(weights, axis=-1, keepdims=True)
    inv_cnt = pl.reciprocal(jnp.maximum(cnt, 1e-9), approx=True)
    mean_emb = summed * inv_cnt
    inv_t = lax.rsqrt(
        jnp.maximum(jnp.sum(mean_emb * mean_emb, axis=-1, keepdims=True), 1e-24))
    tout_ref[...] = (mean_emb * inv_t).astype(tout_ref.dtype)


# ------------------------------------------------------------------
# One-time parameter preparation (hoisted out of the per-call path)
# ------------------------------------------------------------------
def prepare_params(params):
    """PyTorch-layout params -> kernel layout.
    audio_proj_w (Dout, Din) f32 -> pre-transposed bf16 (Din, Dout) MXU operand;
    embedding table stored bf16; bias kept f32 (added post-matmul)."""
    return {
        "audio_proj_wt": jnp.asarray(params["audio_proj_w"]).T.astype(jnp.bfloat16),
        "audio_proj_b": jnp.asarray(params["audio_proj_b"]).reshape(1, -1).astype(jnp.float32),
        "text_embed_table": jnp.asarray(params["text_embed_table"]).astype(jnp.bfloat16),
    }


# ------------------------------------------------------------------
# Wrapper: single pallas_call for the whole forward pass
# ------------------------------------------------------------------
def pretrain_random_attr_vector_forward(kparams, audio_embeds, text, targets, *,
                                        max_tb=256):
    """audio_embeds: (B, Din) f32
       text: {'input_ids': (B, S) int, 'attention_mask': (B, S) int/float}
       kparams: output of prepare_params(...)
    """
    wt = kparams["audio_proj_wt"]            # (Din, Dout) bf16, pre-transposed
    b2 = kparams["audio_proj_b"]             # (1, Dout) f32
    tbl = kparams["text_embed_table"]        # (V, Dtxt) bf16
    Din, Dout = wt.shape
    V, Dtxt = tbl.shape

    B = audio_embeds.shape[0]
    x = audio_embeds.astype(jnp.bfloat16)    # bf16 MXU operand (f32 accumulate in-kernel)
    ids = text["input_ids"].astype(jnp.int32)
    mask = text["attention_mask"].astype(jnp.float32)
    S = ids.shape[1]

    # Batch tiling: whole (un-padded) batch in one grid step when it fits VMEM,
    # otherwise 256-row tiles (MXU-filling, multiple of 128, megacore-shardable).
    if B <= max_tb:
        tb, n_tiles, Bp = B, 1, B            # full-dim block -> no jnp.pad copies
    else:
        tb = max_tb
        n_tiles = pl.cdiv(B, tb)
        Bp = n_tiles * tb
        if Bp != B:
            # TODO(synk): mask the ragged tail in-kernel instead of padding.
            pad = Bp - B
            x = jnp.pad(x, ((0, pad), (0, 0)))
            ids = jnp.pad(ids, ((0, pad), (0, 0)))
            mask = jnp.pad(mask, ((0, pad), (0, 0)))

    # Explicit scoped-VMEM budget (defaults: 16 MiB v5e / 32 MiB v6e,v7x); capped at
    # 64 MiB so the request stays within v7x's physical per-core VMEM.
    est = (2 * (_nbytes((tb, Din), jnp.bfloat16)
                + _nbytes((tb, S), jnp.int32) + _nbytes((tb, S), jnp.float32)
                + _nbytes((tb, Dout), jnp.float32) + _nbytes((tb, Dtxt), jnp.float32))
           + _nbytes(wt.shape, wt.dtype) + _nbytes(b2.shape, b2.dtype)
           + _nbytes(tbl.shape, tbl.dtype))
    vmem_limit = int(min(64 * 2 ** 20, max(32 * 2 ** 20, 4 * est)))

    def resident(shape):
        # Grid-invariant block: single-buffered (no pointless double-buffer copy).
        return pl.BlockSpec(shape, lambda i: (0, 0), pipeline_mode=pl.Buffered(1))

    audio_proj, text_proj = pl.pallas_call(
        _fused_kernel,
        out_shape=(
            jax.ShapeDtypeStruct((Bp, Dout), jnp.float32),
            jax.ShapeDtypeStruct((Bp, Dtxt), jnp.float32),
        ),
        grid_spec=pltpu.PrefetchScalarGridSpec(
            num_scalar_prefetch=0,
            grid=(n_tiles,),
            in_specs=[
                pl.BlockSpec((tb, Din), lambda i: (i, 0)),   # audio embeds (bf16)
                resident((Din, Dout)),                       # W^T        (bf16, resident)
                resident((1, Dout)),                         # bias       (f32,  resident)
                pl.BlockSpec((tb, S), lambda i: (i, 0)),     # input_ids
                pl.BlockSpec((tb, S), lambda i: (i, 0)),     # attention_mask
                resident((V, Dtxt)),                         # embed table (bf16, resident)
            ],
            out_specs=[
                pl.BlockSpec((tb, Dout), lambda i: (i, 0)),
                pl.BlockSpec((tb, Dtxt), lambda i: (i, 0)),
            ],
        ),
        compiler_params=pltpu.CompilerParams(
            dimension_semantics=("parallel",),               # batch tiles shard across cores
            vmem_limit_bytes=vmem_limit,
        ),
    )(x, wt, b2, ids, mask, tbl)

    if Bp != B:
        audio_proj = audio_proj[:B]
        text_proj = text_proj[:B]
    return {
        "audio_proj": audio_proj,
        "text_proj": text_proj,
        "audio_target": targets,
        "text_target": targets,
    }


# ------------------------------------------------------------------
# Pure-JAX references for correctness checks
# ------------------------------------------------------------------
def _reference_f32(raw, audio_embeds, text):
    y = audio_embeds @ raw["audio_proj_w"].T + raw["audio_proj_b"]
    a = y / jnp.maximum(jnp.linalg.norm(y, axis=-1, keepdims=True), 1e-12)
    tok = jnp.take(raw["text_embed_table"], text["input_ids"], axis=0)
    m = text["attention_mask"].astype(jnp.float32)
    mean = jnp.sum(tok * m[:, :, None], axis=1) / jnp.maximum(
        jnp.sum(m, axis=1, keepdims=True), 1e-9)
    t = mean / jnp.maximum(jnp.linalg.norm(mean, axis=-1, keepdims=True), 1e-12)
    return a, t


def _reference_bf16(raw, audio_embeds, text):
    # Mirrors the kernel's bf16 MXU operands (f32 accumulation) for a tight check.
    y = jnp.dot(audio_embeds.astype(jnp.bfloat16),
                raw["audio_proj_w"].T.astype(jnp.bfloat16),
                preferred_element_type=jnp.float32) + raw["audio_proj_b"]
    a = y / jnp.maximum(jnp.linalg.norm(y, axis=-1, keepdims=True), 1e-12)
    tok = jnp.take(raw["text_embed_table"].astype(jnp.bfloat16),
                   text["input_ids"], axis=0).astype(jnp.float32)
    m = text["attention_mask"].astype(jnp.float32)
    mean = jnp.sum(tok * m[:, :, None], axis=1) / jnp.maximum(
        jnp.sum(m, axis=1, keepdims=True), 1e-9)
    t = mean / jnp.maximum(jnp.linalg.norm(mean, axis=-1, keepdims=True), 1e-12)
    return a, t


if __name__ == "__main__":
    key = jax.random.PRNGKey(0)
    B = 12                # batch (not a multiple of 8 -> exercises the full-dim block path)
    AUDIO_DIM = 256       # audio_embed_dim
    TEXT_DIM = 128        # text_encoder.embed_dim
    SEQ = 16              # token sequence length
    VOCAB = 100

    k1, k2, k3, k4, k5, k6 = jax.random.split(key, 6)

    raw_params = {
        # nn.Linear(AUDIO_DIM, TEXT_DIM) — deterministic init
        "audio_proj_w": jax.random.normal(k1, (TEXT_DIM, AUDIO_DIM), jnp.float32) * 0.02,
        "audio_proj_b": jax.random.normal(k2, (TEXT_DIM,), jnp.float32) * 0.01,
        # frozen text-encoder stand-in embedding table
        "text_embed_table": jax.random.normal(k3, (VOCAB, TEXT_DIM), jnp.float32),
    }
    kparams = prepare_params(raw_params)   # one-time: pre-transpose + bf16 cast

    audio_embeds = jax.random.normal(k4, (B, AUDIO_DIM), jnp.float32)
    input_ids = jax.random.randint(k5, (B, SEQ), 0, VOCAB)
    attention_mask = (jax.random.uniform(k6, (B, SEQ)) > 0.2).astype(jnp.int32)
    attention_mask = attention_mask.at[:, 0].set(1)  # at least one valid token per row
    text = {"input_ids": input_ids, "attention_mask": attention_mask}
    targets = jnp.arange(B, dtype=jnp.int32)

    out = pretrain_random_attr_vector_forward(kparams, audio_embeds, text, targets)
    jax.block_until_ready(out)

    a_bf, t_bf = _reference_bf16(raw_params, audio_embeds, text)
    a_f32, t_f32 = _reference_f32(raw_params, audio_embeds, text)

    assert out["audio_proj"].shape == (B, TEXT_DIM)
    assert out["text_proj"].shape == (B, TEXT_DIM)
    # Tight check vs a reference with matching bf16 MXU operands (f32 accumulation).
    assert jnp.allclose(out["audio_proj"], a_bf, atol=2e-4, rtol=2e-3)
    assert jnp.allclose(out["text_proj"], t_bf, atol=2e-4, rtol=2e-3)
    # Loose sanity check vs the full-f32 reference (bounds bf16 input degradation).
    assert jnp.allclose(out["audio_proj"], a_f32, atol=2e-2, rtol=2e-2)
    assert jnp.allclose(out["text_proj"], t_f32, atol=2e-2, rtol=2e-2)
    assert jnp.array_equal(out["audio_target"], targets)
    assert jnp.array_equal(out["text_target"], targets)

    print("KERNEL_OK")
</pallas_src>

<mosaic_0001>
module attributes {stable_mosaic.version = 11 : i64} {
  func.func @_fused_kernel(%arg0: i32, %arg1: memref<12x256xbf16, #tpu.memory_space<vmem>>, %arg2: memref<256x128xbf16, #tpu.memory_space<vmem>>, %arg3: memref<1x128xf32, #tpu.memory_space<vmem>>, %arg4: memref<12x16xi32, #tpu.memory_space<vmem>>, %arg5: memref<12x16xf32, #tpu.memory_space<vmem>>, %arg6: memref<100x128xbf16, #tpu.memory_space<vmem>>, %arg7: memref<12x128xf32, #tpu.memory_space<vmem>>, %arg8: memref<12x128xf32, #tpu.memory_space<vmem>>) attributes {dimension_semantics = [#tpu.dimension_semantics<parallel>], iteration_bounds = array<i64: 1>, scalar_prefetch = 0 : i64, scratch_operands = 0 : i64, tpu.core_type = #tpu.core_type<tc>, window_params = [{transform_indices = @transform_0, window_bounds = array<i64: 12, 256>}, {pipeline_mode = #tpu.pipeline_mode<synchronous>, transform_indices = @transform_1, window_bounds = array<i64: 256, 128>}, {pipeline_mode = #tpu.pipeline_mode<synchronous>, transform_indices = @transform_2, window_bounds = array<i64: 1, 128>}, {transform_indices = @transform_3, window_bounds = array<i64: 12, 16>}, {transform_indices = @transform_4, window_bounds = array<i64: 12, 16>}, {pipeline_mode = #tpu.pipeline_mode<synchronous>, transform_indices = @transform_5, window_bounds = array<i64: 100, 128>}, {transform_indices = @transform_6, window_bounds = array<i64: 12, 128>}, {transform_indices = @transform_7, window_bounds = array<i64: 12, 128>}]} {
    %c0 = arith.constant 0 : index
    %c0_0 = arith.constant 0 : index
    %0 = vector.load %arg1[%c0, %c0_0] : memref<12x256xbf16, #tpu.memory_space<vmem>>, vector<12x256xbf16>
    %c0_1 = arith.constant 0 : index
    %c0_2 = arith.constant 0 : index
    %1 = vector.load %arg2[%c0_1, %c0_2] : memref<256x128xbf16, #tpu.memory_space<vmem>>, vector<256x128xbf16>
    %cst = arith.constant dense<0.000000e+00> : vector<12x128xf32>
    %2 = tpu.matmul %0, %1, %cst {dimension_numbers = #tpu.dot_dimension_numbers<[1], [0], [0], [1], [0, 0, 1, 1], [], []>} : vector<12x256xbf16>, vector<256x128xbf16>, vector<12x128xf32> -> vector<12x128xf32>
    %c0_3 = arith.constant 0 : index
    %c0_4 = arith.constant 0 : index
    %3 = vector.load %arg3[%c0_3, %c0_4] : memref<1x128xf32, #tpu.memory_space<vmem>>, vector<1x128xf32>
    %4 = vector.broadcast %3 : vector<1x128xf32> to vector<12x128xf32>
    %5 = arith.addf %2, %4 : vector<12x128xf32>
    %6 = arith.mulf %5, %5 : vector<12x128xf32>
    %cst_5 = arith.constant dense<0.000000e+00> : vector<12xf32>
    %7 = vector.multi_reduction <add>, %6, %cst_5 [1] : vector<12x128xf32> to vector<12xf32>
    %8 = vector.shape_cast %7 : vector<12xf32> to vector<12x1xf32>
    %cst_6 = arith.constant 1.000000e-24 : f32
    %9 = vector.broadcast %cst_6 : f32 to vector<12x1xf32>
    %10 = arith.maximumf %8, %9 : vector<12x1xf32>
    %11 = math.rsqrt %10 : vector<12x1xf32>
    %12 = vector.broadcast %11 : vector<12x1xf32> to vector<12x128xf32>
    %13 = arith.mulf %5, %12 : vector<12x128xf32>
    %c0_7 = arith.constant 0 : index
    %c0_8 = arith.constant 0 : index
    %14 = vector.load %arg7[%c0_7, %c0_8] : memref<12x128xf32, #tpu.memory_space<vmem>>, vector<12x128xf32>
    tpu.vector_store %arg7[%c0_7, %c0_8], %13 {strides = array<i32>} : memref<12x128xf32, #tpu.memory_space<vmem>>, vector<12x128xf32>,
    %c0_9 = arith.constant 0 : index
    %c0_10 = arith.constant 0 : index
    %15 = vector.load %arg4[%c0_9, %c0_10] : memref<12x16xi32, #tpu.memory_space<vmem>>, vector<12x16xi32>
    %c0_11 = arith.constant 0 : index
    %c0_12 = arith.constant 0 : index
    %16 = vector.load %arg5[%c0_11, %c0_12] : memref<12x16xf32, #tpu.memory_space<vmem>>, vector<12x16xf32>
    %17 = tpu.iota {dimensions = array<i32: 1>} : vector<12x100xi32>
    %cst_13 = arith.constant 0.000000e+00 : f32
    %18 = vector.broadcast %cst_13 : f32 to vector<12x100xf32>
    %19 = vector.extract_strided_slice %15 {offsets = [0, 0], sizes = [12, 1], strides = [1, 1]} : vector<12x16xi32> to vector<12x1xi32>
    %20 = vector.extract_strided_slice %16 {offsets = [0, 0], sizes = [12, 1], strides = [1, 1]} : vector<12x16xf32> to vector<12x1xf32>
    %21 = vector.broadcast %19 : vector<12x1xi32> to vector<12x100xi32>
    %22 = arith.cmpi eq, %21, %17 : vector<12x100xi32>
    %cst_14 = arith.constant 0.000000e+00 : f32
    %23 = vector.shape_cast %20 : vector<12x1xf32> to vector<12x1xf32>
    %24 = vector.broadcast %23 : vector<12x1xf32> to vector<12x100xf32>
    %25 = vector.broadcast %cst_14 : f32 to vector<12x100xf32>
    %26 = arith.select %22, %24, %25 : vector<12x100xi1>, vector<12x100xf32>
    %27 = arith.addf %18, %26 : vector<12x100xf32>
    %28 = vector.extract_strided_slice %15 {offsets = [0, 1], sizes = [12, 1], strides = [1, 1]} : vector<12x16xi32> to vector<12x1xi32>
    %29 = vector.extract_strided_slice %16 {offsets = [0, 1], sizes = [12, 1], strides = [1, 1]} : vector<12x16xf32> to vector<12x1xf32>
    %30 = vector.broadcast %28 : vector<12x1xi32> to vector<12x100xi32>
    %31 = arith.cmpi eq, %30, %17 : vector<12x100xi32>
    %cst_15 = arith.constant 0.000000e+00 : f32
    %32 = vector.shape_cast %29 : vector<12x1xf32> to vector<12x1xf32>
    %33 = vector.broadcast %32 : vector<12x1xf32> to vector<12x100xf32>
    %34 = vector.broadcast %cst_15 : f32 to vector<12x100xf32>
    %35 = arith.select %31, %33, %34 : vector<12x100xi1>, vector<12x100xf32>
    %36 = arith.addf %27, %35 : vector<12x100xf32>
    %37 = vector.extract_strided_slice %15 {offsets = [0, 2], sizes = [12, 1], strides = [1, 1]} : vector<12x16xi32> to vector<12x1xi32>
    %38 = vector.extract_strided_slice %16 {offsets = [0, 2], sizes = [12, 1], strides = [1, 1]} : vector<12x16xf32> to vector<12x1xf32>
    %39 = vector.broadcast %37 : vector<12x1xi32> to vector<12x100xi32>
    %40 = arith.cmpi eq, %39, %17 : vector<12x100xi32>
    %cst_16 = arith.constant 0.000000e+00 : f32
    %41 = vector.shape_cast %38 : vector<12x1xf32> to vector<12x1xf32>
    %42 = vector.broadcast %41 : vector<12x1xf32> to vector<12x100xf32>
    %43 = vector.broadcast %cst_16 : f32 to vector<12x100xf32>
    %44 = arith.select %40, %42, %43 : vector<12x100xi1>, vector<12x100xf32>
    %45 = arith.addf %36, %44 : vector<12x100xf32>
    %46 = vector.extract_strided_slice %15 {offsets = [0, 3], sizes = [12, 1], strides = [1, 1]} : vector<12x16xi32> to vector<12x1xi32>
    %47 = vector.extract_strided_slice %16 {offsets = [0, 3], sizes = [12, 1], strides = [1, 1]} : vector<12x16xf32> to vector<12x1xf32>
    %48 = vector.broadcast %46 : vector<12x1xi32> to vector<12x100xi32>
    %49 = arith.cmpi eq, %48, %17 : vector<12x100xi32>
    %cst_17 = arith.constant 0.000000e+00 : f32
    %50 = vector.shape_cast %47 : vector<12x1xf32> to vector<12x1xf32>
    %51 = vector.broadcast %50 : vector<12x1xf32> to vector<12x100xf32>
    %52 = vector.broadcast %cst_17 : f32 to vector<12x100xf32>
    %53 = arith.select %49, %51, %52 : vector<12x100xi1>, vector<12x100xf32>
    %54 = arith.addf %45, %53 : vector<12x100xf32>
    %55 = vector.extract_strided_slice %15 {offsets = [0, 4], sizes = [12, 1], strides = [1, 1]} : vector<12x16xi32> to vector<12x1xi32>
    %56 = vector.extract_strided_slice %16 {offsets = [0, 4], sizes = [12, 1], strides = [1, 1]} : vector<12x16xf32> to vector<12x1xf32>
    %57 = vector.broadcast %55 : vector<12x1xi32> to vector<12x100xi32>
    %58 = arith.cmpi eq, %57, %17 : vector<12x100xi32>
    %cst_18 = arith.constant 0.000000e+00 : f32
    %59 = vector.shape_cast %56 : vector<12x1xf32> to vector<12x1xf32>
    %60 = vector.broadcast %59 : vector<12x1xf32> to vector<12x100xf32>
    %61 = vector.broadcast %cst_18 : f32 to vector<12x100xf32>
    %62 = arith.select %58, %60, %61 : vector<12x100xi1>, vector<12x100xf32>
    %63 = arith.addf %54, %62 : vector<12x100xf32>
    %64 = vector.extract_strided_slice %15 {offsets = [0, 5], sizes = [12, 1], strides = [1, 1]} : vector<12x16xi32> to vector<12x1xi32>
    %65 = vector.extract_strided_slice %16 {offsets = [0, 5], sizes = [12, 1], strides = [1, 1]} : vector<12x16xf32> to vector<12x1xf32>
    %66 = vector.broadcast %64 : vector<12x1xi32> to vector<12x100xi32>
    %67 = arith.cmpi eq, %66, %17 : vector<12x100xi32>
    %cst_19 = arith.constant 0.000000e+00 : f32
    %68 = vector.shape_cast %65 : vector<12x1xf32> to vector<12x1xf32>
    %69 = vector.broadcast %68 : vector<12x1xf32> to vector<12x100xf32>
    %70 = vector.broadcast %cst_19 : f32 to vector<12x100xf32>
    %71 = arith.select %67, %69, %70 : vector<12x100xi1>, vector<12x100xf32>
    %72 = arith.addf %63, %71 : vector<12x100xf32>
    %73 = vector.extract_strided_slice %15 {offsets = [0, 6], sizes = [12, 1], strides = [1, 1]} : vector<12x16xi32> to vector<12x1xi32>
    %74 = vector.extract_strided_slice %16 {offsets = [0, 6], sizes = [12, 1], strides = [1, 1]} : vector<12x16xf32> to vector<12x1xf32>
    %75 = vector.broadcast %73 : vector<12x1xi32> to vector<12x100xi32>
    %76 = arith.cmpi eq, %75, %17 : vector<12x100xi32>
    %cst_20 = arith.constant 0.000000e+00 : f32
    %77 = vector.shape_cast %74 : vector<12x1xf32> to vector<12x1xf32>
    %78 = vector.broadcast %77 : vector<12x1xf32> to vector<12x100xf32>
    %79 = vector.broadcast %cst_20 : f32 to vector<12x100xf32>
    %80 = arith.select %76, %78, %79 : vector<12x100xi1>, vector<12x100xf32>
    %81 = arith.addf %72, %80 : vector<12x100xf32>
    %82 = vector.extract_strided_slice %15 {offsets = [0, 7], sizes = [12, 1], strides = [1, 1]} : vector<12x16xi32> to vector<12x1xi32>
    %83 = vector.extract_strided_slice %16 {offsets = [0, 7], sizes = [12, 1], strides = [1, 1]} : vector<12x16xf32> to vector<12x1xf32>
    %84 = vector.broadcast %82 : vector<12x1xi32> to vector<12x100xi32>
    %85 = arith.cmpi eq, %84, %17 : vector<12x100xi32>
    %cst_21 = arith.constant 0.000000e+00 : f32
    %86 = vector.shape_cast %83 : vector<12x1xf32> to vector<12x1xf32>
    %87 = vector.broadcast %86 : vector<12x1xf32> to vector<12x100xf32>
    %88 = vector.broadcast %cst_21 : f32 to vector<12x100xf32>
    %89 = arith.select %85, %87, %88 : vector<12x100xi1>, vector<12x100xf32>
    %90 = arith.addf %81, %89 : vector<12x100xf32>
    %91 = vector.extract_strided_slice %15 {offsets = [0, 8], sizes = [12, 1], strides = [1, 1]} : vector<12x16xi32> to vector<12x1xi32>
    %92 = vector.extract_strided_slice %16 {offsets = [0, 8], sizes = [12, 1], strides = [1, 1]} : vector<12x16xf32> to vector<12x1xf32>
    %93 = vector.broadcast %91 : vector<12x1xi32> to vector<12x100xi32>
    %94 = arith.cmpi eq, %93, %17 : vector<12x100xi32>
    %cst_22 = arith.constant 0.000000e+00 : f32
    %95 = vector.shape_cast %92 : vector<12x1xf32> to vector<12x1xf32>
    %96 = vector.broadcast %95 : vector<12x1xf32> to vector<12x100xf32>
    %97 = vector.broadcast %cst_22 : f32 to vector<12x100xf32>
    %98 = arith.select %94, %96, %97 : vector<12x100xi1>, vector<12x100xf32>
    %99 = arith.addf %90, %98 : vector<12x100xf32>
    %100 = vector.extract_strided_slice %15 {offsets = [0, 9], sizes = [12, 1], strides = [1, 1]} : vector<12x16xi32> to vector<12x1xi32>
    %101 = vector.extract_strided_slice %16 {offsets = [0, 9], sizes = [12, 1], strides = [1, 1]} : vector<12x16xf32> to vector<12x1xf32>
    %102 = vector.broadcast %100 : vector<12x1xi32> to vector<12x100xi32>
    %103 = arith.cmpi eq, %102, %17 : vector<12x100xi32>
    %cst_23 = arith.constant 0.000000e+00 : f32
    %104 = vector.shape_cast %101 : vector<12x1xf32> to vector<12x1xf32>
    %105 = vector.broadcast %104 : vector<12x1xf32> to vector<12x100xf32>
    %106 = vector.broadcast %cst_23 : f32 to vector<12x100xf32>
    %107 = arith.select %103, %105, %106 : vector<12x100xi1>, vector<12x100xf32>
    %108 = arith.addf %99, %107 : vector<12x100xf32>
    %109 = vector.extract_strided_slice %15 {offsets = [0, 10], sizes = [12, 1], strides = [1, 1]} : vector<12x16xi32> to vector<12x1xi32>
    %110 = vector.extract_strided_slice %16 {offsets = [0, 10], sizes = [12, 1], strides = [1, 1]} : vector<12x16xf32> to vector<12x1xf32>
    %111 = vector.broadcast %109 : vector<12x1xi32> to vector<12x100xi32>
    %112 = arith.cmpi eq, %111, %17 : vector<12x100xi32>
    %cst_24 = arith.constant 0.000000e+00 : f32
    %113 = vector.shape_cast %110 : vector<12x1xf32> to vector<12x1xf32>
    %114 = vector.broadcast %113 : vector<12x1xf32> to vector<12x100xf32>
    %115 = vector.broadcast %cst_24 : f32 to vector<12x100xf32>
    %116 = arith.select %112, %114, %115 : vector<12x100xi1>, vector<12x100xf32>
    %117 = arith.addf %108, %116 : vector<12x100xf32>
    %118 = vector.extract_strided_slice %15 {offsets = [0, 11], sizes = [12, 1], strides = [1, 1]} : vector<12x16xi32> to vector<12x1xi32>
    %119 = vector.extract_strided_slice %16 {offsets = [0, 11], sizes = [12, 1], strides = [1, 1]} : vector<12x16xf32> to vector<12x1xf32>
    %120 = vector.broadcast %118 : vector<12x1xi32> to vector<12x100xi32>
    %121 = arith.cmpi eq, %120, %17 : vector<12x100xi32>
    %cst_25 = arith.constant 0.000000e+00 : f32
    %122 = vector.shape_cast %119 : vector<12x1xf32> to vector<12x1xf32>
    %123 = vector.broadcast %122 : vector<12x1xf32> to vector<12x100xf32>
    %124 = vector.broadcast %cst_25 : f32 to vector<12x100xf32>
    %125 = arith.select %121, %123, %124 : vector<12x100xi1>, vector<12x100xf32>
    %126 = arith.addf %117, %125 : vector<12x100xf32>
    %127 = vector.extract_strided_slice %15 {offsets = [0, 12], sizes = [12, 1], strides = [1, 1]} : vector<12x16xi32> to vector<12x1xi32>
    %128 = vector.extract_strided_slice %16 {offsets = [0, 12], sizes = [12, 1], strides = [1, 1]} : vector<12x16xf32> to vector<12x1xf32>
    %129 = vector.broadcast %127 : vector<12x1xi32> to vector<12x100xi32>
    %130 = arith.cmpi eq, %129, %17 : vector<12x100xi32>
    %cst_26 = arith.constant 0.000000e+00 : f32
    %131 = vector.shape_cast %128 : vector<12x1xf32> to vector<12x1xf32>
    %132 = vector.broadcast %131 : vector<12x1xf32> to vector<12x100xf32>
    %133 = vector.broadcast %cst_26 : f32 to vector<12x100xf32>
    %134 = arith.select %130, %132, %133 : vector<12x100xi1>, vector<12x100xf32>
    %135 = arith.addf %126, %134 : vector<12x100xf32>
    %136 = vector.extract_strided_slice %15 {offsets = [0, 13], sizes = [12, 1], strides = [1, 1]} : vector<12x16xi32> to vector<12x1xi32>
    %137 = vector.extract_strided_slice %16 {offsets = [0, 13], sizes = [12, 1], strides = [1, 1]} : vector<12x16xf32> to vector<12x1xf32>
    %138 = vector.broadcast %136 : vector<12x1xi32> to vector<12x100xi32>
    %139 = arith.cmpi eq, %138, %17 : vector<12x100xi32>
    %cst_27 = arith.constant 0.000000e+00 : f32
    %140 = vector.shape_cast %137 : vector<12x1xf32> to vector<12x1xf32>
    %141 = vector.broadcast %140 : vector<12x1xf32> to vector<12x100xf32>
    %142 = vector.broadcast %cst_27 : f32 to vector<12x100xf32>
    %143 = arith.select %139, %141, %142 : vector<12x100xi1>, vector<12x100xf32>
    %144 = arith.addf %135, %143 : vector<12x100xf32>
    %145 = vector.extract_strided_slice %15 {offsets = [0, 14], sizes = [12, 1], strides = [1, 1]} : vector<12x16xi32> to vector<12x1xi32>
    %146 = vector.extract_strided_slice %16 {offsets = [0, 14], sizes = [12, 1], strides = [1, 1]} : vector<12x16xf32> to vector<12x1xf32>
    %147 = vector.broadcast %145 : vector<12x1xi32> to vector<12x100xi32>
    %148 = arith.cmpi eq, %147, %17 : vector<12x100xi32>
    %cst_28 = arith.constant 0.000000e+00 : f32
    %149 = vector.shape_cast %146 : vector<12x1xf32> to vector<12x1xf32>
    %150 = vector.broadcast %149 : vector<12x1xf32> to vector<12x100xf32>
    %151 = vector.broadcast %cst_28 : f32 to vector<12x100xf32>
    %152 = arith.select %148, %150, %151 : vector<12x100xi1>, vector<12x100xf32>
    %153 = arith.addf %144, %152 : vector<12x100xf32>
    %154 = vector.extract_strided_slice %15 {offsets = [0, 15], sizes = [12, 1], strides = [1, 1]} : vector<12x16xi32> to vector<12x1xi32>
    %155 = vector.extract_strided_slice %16 {offsets = [0, 15], sizes = [12, 1], strides = [1, 1]} : vector<12x16xf32> to vector<12x1xf32>
    %156 = vector.broadcast %154 : vector<12x1xi32> to vector<12x100xi32>
    %157 = arith.cmpi eq, %156, %17 : vector<12x100xi32>
    %cst_29 = arith.constant 0.000000e+00 : f32
    %158 = vector.shape_cast %155 : vector<12x1xf32> to vector<12x1xf32>
    %159 = vector.broadcast %158 : vector<12x1xf32> to vector<12x100xf32>
    %160 = vector.broadcast %cst_29 : f32 to vector<12x100xf32>
    %161 = arith.select %157, %159, %160 : vector<12x100xi1>, vector<12x100xf32>
    %162 = arith.addf %153, %161 : vector<12x100xf32>
    %163 = arith.truncf %162 : vector<12x100xf32> to vector<12x100xbf16>
    %c0_30 = arith.constant 0 : index
    %c0_31 = arith.constant 0 : index
    %164 = vector.load %arg6[%c0_30, %c0_31] : memref<100x128xbf16, #tpu.memory_space<vmem>>, vector<100x128xbf16>
    %cst_32 = arith.constant dense<0.000000e+00> : vector<12x128xf32>
    %165 = tpu.matmul %163, %164, %cst_32 {dimension_numbers = #tpu.dot_dimension_numbers<[1], [0], [0], [1], [0, 0, 1, 1], [], []>} : vector<12x100xbf16>, vector<100x128xbf16>, vector<12x128xf32> -> vector<12x128xf32>
    %cst_33 = arith.constant dense<0.000000e+00> : vector<12xf32>
    %166 = vector.multi_reduction <add>, %162, %cst_33 [1] : vector<12x100xf32> to vector<12xf32>
    %167 = vector.shape_cast %166 : vector<12xf32> to vector<12x1xf32>
    %cst_34 = arith.constant 9.99999971E-10 : f32
    %168 = vector.broadcast %cst_34 : f32 to vector<12x1xf32>
    %169 = arith.maximumf %167, %168 : vector<12x1xf32>
    %170 = tpu.reciprocal %169 {approx = true} : vector<12x1xf32> -> vector<12x1xf32>
    %171 = vector.broadcast %170 : vector<12x1xf32> to vector<12x128xf32>
    %172 = arith.mulf %165, %171 : vector<12x128xf32>
    %173 = arith.mulf %172, %172 : vector<12x128xf32>
    %cst_35 = arith.constant dense<0.000000e+00> : vector<12xf32>
    %174 = vector.multi_reduction <add>, %173, %cst_35 [1] : vector<12x128xf32> to vector<12xf32>
    %175 = vector.shape_cast %174 : vector<12xf32> to vector<12x1xf32>
    %cst_36 = arith.constant 1.000000e-24 : f32
    %176 = vector.broadcast %cst_36 : f32 to vector<12x1xf32>
    %177 = arith.maximumf %175, %176 : vector<12x1xf32>
    %178 = math.rsqrt %177 : vector<12x1xf32>
    %179 = vector.broadcast %178 : vector<12x1xf32> to vector<12x128xf32>
    %180 = arith.mulf %172, %179 : vector<12x128xf32>
    %c0_37 = arith.constant 0 : index
    %c0_38 = arith.constant 0 : index
    %181 = vector.load %arg8[%c0_37, %c0_38] : memref<12x128xf32, #tpu.memory_space<vmem>>, vector<12x128xf32>
    tpu.vector_store %arg8[%c0_37, %c0_38], %180 {strides = array<i32>} : memref<12x128xf32, #tpu.memory_space<vmem>>, vector<12x128xf32>,
    return
  }
  func.func @transform_0(%arg0: i32) -> (i32, i32) {
    %c0_i32 = arith.constant 0 : i32
    %c0_i32_0 = arith.constant 0 : i32
    return %arg0, %c0_i32 : i32, i32
  }
  func.func @transform_1(%arg0: i32) -> (i32, i32) {
    %c0_i32 = arith.constant 0 : i32
    %c0_i32_0 = arith.constant 0 : i32
    %c0_i32_1 = arith.constant 0 : i32
    return %c0_i32, %c0_i32_0 : i32, i32
  }
  func.func @transform_2(%arg0: i32) -> (i32, i32) {
    %c0_i32 = arith.constant 0 : i32
    %c0_i32_0 = arith.constant 0 : i32
    %c0_i32_1 = arith.constant 0 : i32
    return %c0_i32, %c0_i32_0 : i32, i32
  }
  func.func @transform_3(%arg0: i32) -> (i32, i32) {
    %c0_i32 = arith.constant 0 : i32
    %c0_i32_0 = arith.constant 0 : i32
    return %arg0, %c0_i32 : i32, i32
  }
  func.func @transform_4(%arg0: i32) -> (i32, i32) {
    %c0_i32 = arith.constant 0 : i32
    %c0_i32_0 = arith.constant 0 : i32
    return %arg0, %c0_i32 : i32, i32
  }
  func.func @transform_5(%arg0: i32) -> (i32, i32) {
    %c0_i32 = arith.constant 0 : i32
    %c0_i32_0 = arith.constant 0 : i32
    %c0_i32_1 = arith.constant 0 : i32
    return %c0_i32, %c0_i32_0 : i32, i32
  }
  func.func @transform_6(%arg0: i32) -> (i32, i32) {
    %c0_i32 = arith.constant 0 : i32
    %c0_i32_0 = arith.constant 0 : i32
    return %arg0, %c0_i32 : i32, i32
  }
  func.func @transform_7(%arg0: i32) -> (i32, i32) {
    %c0_i32 = arith.constant 0 : i32
    %c0_i32_0 = arith.constant 0 : i32
    return %arg0, %c0_i32 : i32, i32
  }
}

</mosaic_0001>

<bundles_post_ra>
// kernel: tpu_custom_call.1
= control target key start
LH: loop header
LB: loop body
LE: loop exit
PB: predicated region body
PF: predicated region fallthrough
CT: control target
= control target key end

     0   :  { %13 = vsyncpa [#allocation3], 0  ;;  %s1342_s0 = inlined_call_operand.hbm [shape: bf16[12,256], index: 0, kind: input, shape index: {}]   ;;  %s1343_s1 = inlined_call_operand.hbm [shape: bf16[256,128], index: 1, kind: input, shape index: {}]   ;;  %s1344_s2 = inlined_call_operand.vmem [shape: f32[1,128], index: 2, kind: input, shape index: {}]   ;;  %s1345_s3 = inlined_call_operand.hbm [shape: s32[12,16], index: 3, kind: input, shape index: {}]   ;;  %s1346_s4 = inlined_call_operand.hbm [shape: f32[12,16], index: 4, kind: input, shape index: {}]   ;;  %s1347_s5 = inlined_call_operand.hbm [shape: bf16[100,128], index: 5, kind: input, shape index: {}]   ;;  %s1348_s6 = inlined_call_operand.hbm [shape: f32[12,128], index: 6, kind: output, shape index: {0}]   ;;  %s1349_s7 = inlined_call_operand.hbm [shape: f32[12,128], index: 7, kind: output, shape index: {1}]  }
   0x1   :  { %14 = vsyncpa [#allocation6], 0 }
   0x2   :  { %15 = vsyncpa [#allocation9], 0 }
   0x3   :  { %16 = vsyncpa [#allocation4], 0 }
   0x4   :  { %17 = vsyncpa [#allocation13], 0  ;;  %s1118_s24 = smov [#allocation5]  }
   0x5   :  { %s35_s25 = sshll.u32 %s1118_s24, 4  ;;  %s36_s25 = int_to_ptr.vmem [resolvable:$true] %s35_s25 }
   0x6   :  { %s976_s26 = scalar_lea.vmem %s36_s25, 2048  ;;  %p981_p1 = scmp.lt.s32.totalorder %s36_s25, %s36_s25 }
   0x7   :  { %p977_p0 = scmp.ne.s32.totalorder %s36_s25, %s976_s26  ;;  %p982_p2 = scmp.lt.s32.totalorder %s976_s26, %s976_s26 }
   0x9   :  { %p983_p3 = por %p982_p2, %p981_p1 }
   0xb   :  { %p984_p4 = pnand %p983_p3, %p977_p0 }
   0xd   :  { %987 = shalt.err (!%p984_p4)
}
   0xe   :  { %s1119_s27 = smov 64   ;;  %s1120_s28 = smov 4  }
   0xf   :  { %41 = dma.hbm_to_vmem [thread:$0]  %s1343_s1, 2048, %s36_s25, [#allocation6], %s1119_s27, %s1119_s27, %s1120_s28  }
  0x10   :  { %s1121_s8 = smov [#allocation8]   ;;  %s1122_s10 = smov [#allocation2]  }
  0x11   :  { %s61_s9 = sshll.u32 %s1121_s8, 4  ;;  %s23_s11 = sshll.u32 %s1122_s10, 4  ;;  %s62_s9 = int_to_ptr.vmem [resolvable:$true] %s61_s9  ;;  %s24_s11 = int_to_ptr.vmem [resolvable:$true] %s23_s11 }
  0x12   :  { %s996_s12 = scalar_lea.vmem %s62_s9, 256  ;;  %p1001_p6 = scmp.lt.s32.totalorder %s62_s9, %s62_s9 }
  0x13   :  { %p997_p5 = scmp.ne.s32.totalorder %s62_s9, %s996_s12  ;;  %p1002_p7 = scmp.lt.s32.totalorder %s996_s12, %s996_s12 }
  0x15   :  { %p1003_p8 = por %p1002_p7, %p1001_p6 }
  0x17   :  { %p1004_p9 = pnand %p1003_p8, %p997_p5 }
  0x19   :  { %1007 = shalt.err (!%p1004_p9)
}
  0x1a   :  { %s1123_s13 = smov 128   ;;  %s1124_s14 = smov 8  }
  0x1b   :  { %67 = dma.hbm_to_vmem [thread:$0]  %s1346_s4, 256, %s62_s9, [#allocation9], %s1123_s13, %s1123_s13, %s1124_s14  }
  0x1c   :  { %s1016_s1 = scalar_lea.vmem %s24_s11, 256  ;;  %p1021_p11 = scmp.lt.s32.totalorder %s24_s11, %s24_s11 }
  0x1d   :  { %p1017_p10 = scmp.ne.s32.totalorder %s24_s11, %s1016_s1  ;;  %p1022_p12 = scmp.lt.s32.totalorder %s1016_s1, %s1016_s1 }
  0x1f   :  { %p1023_p13 = por %p1022_p12, %p1021_p11 }
  0x21   :  { %p1024_p0 = pnand %p1023_p13, %p1017_p10 }
  0x23   :  { %1027 = shalt.err (!%p1024_p0)
}
  0x24   :  { %29 = dma.hbm_to_vmem [thread:$0]  %s1342_s0, 256, %s24_s11, [#allocation3], %s1123_s13, %s1123_s13, %s1124_s14  }
  0x25   :  { %s1125_s19 = smov [#allocation7]   ;;  %s1126_s21 = smov [#allocation10]  }
  0x26   :  { %s49_s20 = sshll.u32 %s1125_s19, 4  ;;  %s73_s4 = sshll.u32 %s1126_s21, 4  ;;  %s50_s20 = int_to_ptr.vmem [resolvable:$true] %s49_s20  ;;  %s74_s4 = int_to_ptr.vmem [resolvable:$true] %s73_s4 }
  0x27   :  { %s1036_s22 = scalar_lea.vmem %s50_s20, 256  ;;  %p1041_p2 = scmp.lt.s32.totalorder %s50_s20, %s50_s20 }
  0x28   :  { %p1037_p1 = scmp.ne.s32.totalorder %s50_s20, %s1036_s22  ;;  %p1042_p3 = scmp.lt.s32.totalorder %s1036_s22, %s1036_s22 }
  0x2a   :  { %p1043_p4 = por %p1042_p3, %p1041_p2 }
  0x2c   :  { %p1044_p5 = pnand %p1043_p4, %p1037_p1 }
  0x2e   :  { %1047 = shalt.err (!%p1044_p5)
}
  0x2f   :  { %55 = dma.hbm_to_vmem [thread:$0]  %s1345_s3, 256, %s50_s20, [#allocation6], %s1123_s13, %s1123_s13, %s1124_s14  }
  0x30   :  { %s1056_s0 = scalar_lea.vmem %s74_s4, 832  ;;  %p1061_p7 = scmp.lt.s32.totalorder %s74_s4, %s74_s4 }
  0x31   :  { %p1057_p6 = scmp.ne.s32.totalorder %s74_s4, %s1056_s0  ;;  %p1062_p8 = scmp.lt.s32.totalorder %s1056_s0, %s1056_s0 }
  0x33   :  { %p1063_p9 = por %p1062_p8, %p1061_p7 }
  0x35   :  { %p1064_p10 = pnand %p1063_p9, %p1057_p6 }
  0x37   :  { %1067 = shalt.err (!%p1064_p10)
}
  0x38   :  { %79 = dma.hbm_to_vmem [thread:$0]  %s1347_s5, 832, %s74_s4, [#allocation9], %s1119_s27, %s1119_s27, %s1120_s28  }
  0x39   :  { %1108 = dma.done.wait [#allocation3], 256  }
  0x3a   :  { %1109 = vsyncadd [#allocation3], 4294967040 }
  0x3b   :  { %1110 = dma.done.wait [#allocation6], 2304  }
  0x3c   :  { %1111 = vsyncadd [#allocation6], 4294964992 }
  0x3d   :  { %1112 = dma.done.wait [#allocation9], 1088  }
  0x3e   :  { %1113 = vsyncadd [#allocation9], 4294966208  ;;  %v1127_v0 = vmov 1   ;;  %v1128_v1 = vmov 0   ;;  %v1217_v2 = vld [vmem:[#allocation7] sm:$0xff]  ;;  %v930_v4 = vld [vmem:[#allocation5 + $0x78] sm:$0xff]   ;;  %v304_v40 = vlaneseq }
  0x3f   :  { %898 = vset.pattern.permute.xlu1 %v1127_v0  ;;  %897 = vset.pattern.permute.xlu0 %v1128_v1  ;;  %v1221_v3 = vld [vmem:[#allocation7 + $0x8] sm:$0xf]  ;;  %v931_v5 = vld [vmem:[#allocation5 + $0x38] sm:$0xff]   ;;  %v1223_v6 = vld [vmem:[#allocation8] sm:$0xff]  ;;  %v1129_v15 = vmov 2   ;;  %v1130_v19 = vmov 3  }
  0x40   :  { %329 = vperm.xlu1 %898, %v1217_v2   ;;  %307 = vperm.xlu0 %897, %v1217_v2   ;;  %v932_v7 = vld [vmem:[#allocation5 + $0x70] sm:$0xff]   ;;  %v1227_v8 = vld [vmem:[#allocation8 + $0x8] sm:$0xf]  ;;  %v934_v10 = vld [vmem:[#allocation5 + $0x68] sm:$0xff]   ;;  %v1131_v24 = vmov 4   ;;  %v1132_v26 = vmov 5  }
  0x41   :  { %820 = vmatprep.subr.bf16.mxu0 %v930_v4  ;;  %v933_v9 = vld [vmem:[#allocation5 + $0x30] sm:$0xff]   ;;  %v935_v11 = vld [vmem:[#allocation5 + $0x28] sm:$0xff]   ;;  %v936_v12 = vld [vmem:[#allocation5 + $0x60] sm:$0xff]   ;;  %v1133_v28 = vmov 6   ;;  %v1134_v29 = vmov 7   ;;  %v1135_v30 = vmov 8  }
  0x42   :  { %821 = vmatpush3.bf16.msra.mxu0 %v931_v5  ;;  %v937_v13 = vld [vmem:[#allocation5 + $0x20] sm:$0xff]   ;;  %v938_v14 = vld [vmem:[#allocation5 + $0x58] sm:$0xff]   ;;  %v940_v18 = vld [vmem:[#allocation5 + $0x50] sm:$0xff]   ;;  %v1136_v31 = vmov 9   ;;  %v1137_v32 = vmov 10   ;;  %v1138_v33 = vmov 11  }
  0x43   :  { %822 = vmatprep.subr.bf16.mxu0 %v932_v7  ;;  %v948_v16 = vld [vmem:[#allocation2 + $0x4] ss:$8 sps:$4 sm:$0x3f]   ;;  %v942_v21 = vld [vmem:[#allocation5 + $0x48] sm:$0xff]   ;;  %v944_v23 = vld [vmem:[#allocation5 + $0x40] sm:$0xff]   ;;  %v1139_v34 = vmov 12  }
  0x44   :  { %332 = vperm.xlu1 %898, %v1221_v3   ;;  %310 = vperm.xlu0 %897, %v1221_v3   ;;  %v939_v17 = vld [vmem:[#allocation5 + $0x18] sm:$0xff]   ;;  %v941_v20 = vld [vmem:[#allocation5 + $0x10] sm:$0xff]   ;;  %v943_v22 = vld [vmem:[#allocation5 + $0x8] sm:$0xff]   ;;  %v1140_v35 = vmov 13   ;;  %v1141_v36 = vmov 14   ;;  %v1142_v37 = vmov 15  }
  0x45   :  { %275 = vmatprep.mubr.bf16.mxu0 %v948_v16  ;;  %v945_v25 = vld [vmem:[#allocation5] sm:$0xff]   ;;  %v946_v27 = vld [vmem:[#allocation2] ss:$8 sps:$4 sm:$0x3f]   ;;  %v1281_v43 = vand.u32 127, %v304_v40  ;;  %vm685_vm4 = vcmask 1041408  }
  0x46   :  { %823 = vmatpush3.bf16.msra.mxu0 %v933_v9  ;;  %v949_v54 = vld [vmem:[#allocation10 + $0x30] ss:$0 sps:$4 sm:$0x33]   ;;  %v1143_v55 = vmov 0.0   ;;  %v950_v59 = vld [vmem:[#allocation10 + $0x28] sm:$0xff]   ;;  %v951_v62 = vld [vmem:[#allocation10 + $0x20] sm:$0xff]  }
  0x47   :  { %824 = vmatprep.subr.bf16.mxu0 %v934_v10  ;;  %850 = vmatprep.subr.bf16.mxu1 %v1143_v55  ;;  %v687_v56 = vsel %vm685_vm4, %v949_v54, 0  ;;  %v952_v7 = vld [vmem:[#allocation10 + $0x18] sm:$0xff]   ;;  %vm1144_vm10 = vmmov 0  }
  0x48   :  { %899 = vset.pattern.permute.xlu1 %v1128_v1  ;;  %316 = vperm.xlu0 %897, %v1223_v6  }
  0x49   :  { %321 = vperm.xlu1 %899, %v1227_v8   ;;  %851 = vmatpush3.bf16.msra.mxu1 %v687_v56 }
  0x4a   :  { %825 = vmatpush3.bf16.msra.mxu0 %v935_v11  ;;  %852 = vmatprep.subr.bf16.mxu1 %v1143_v55  ;;  %v953_v11 = vld [vmem:[#allocation10 + $0x10] sm:$0xff]  }
  0x4b   :  { %826 = vmatprep.subr.bf16.mxu0 %v936_v12  ;;  %864 = vmatprep.mubr.msk.bf16.mxu1 %vm1144_vm10, %v1143_v55 }
  0x4c   :  { %900 = vset.pattern.permute.xlu0 %v1127_v0 }
  0x4d   :  { %901 = vset.pattern.permute.xlu1 %v1127_v0  ;;  %337 = vperm.xlu0 %900, %v1223_v6  }
  0x4e   :  { %341 = vperm.xlu1 %901, %v1227_v8   ;;  %827 = vmatpush3.bf16.msra.mxu0 %v937_v13 }
  0x4f   :  { %828 = vmatprep.subr.bf16.mxu0 %v938_v14  ;;  %853 = vmatpush3.bf16.msra.mxu1 %v950_v59 }
  0x50   :  { %854 = vmatprep.subr.bf16.mxu1 %v1143_v55 }
  0x51   :  { %903 = vset.pattern.permute.xlu0 %v1129_v15 }
  0x52   :  { %902 = vset.pattern.permute.xlu1 %v1129_v15  ;;  %352 = vperm.xlu0 %903, %v1221_v3   ;;  %v954_v15 = vld [vmem:[#allocation10 + $0x8] sm:$0xff]  }
  0x53   :  { %349 = vperm.xlu1 %902, %v1217_v2   ;;  %829 = vmatpush3.bf16.msra.mxu0 %v939_v17 }
  0x54   :  { %830 = vmatprep.subr.bf16.mxu0 %v940_v18  ;;  %855 = vmatpush3.bf16.msra.mxu1 %v951_v62 }
  0x55   :  { %856 = vmatprep.subr.bf16.mxu1 %v1143_v55 }
  0x56   :  { %904 = vset.pattern.permute.xlu0 %v1130_v19 }
  0x57   :  { %357 = vperm.xlu1 %902, %v1223_v6   ;;  %369 = vperm.xlu0 %904, %v1217_v2  }
  0x58   :  { %831 = vmatpush3.bf16.msra.mxu0 %v941_v20  ;;  %857 = vmatpush3.bf16.msra.mxu1 %v952_v7 }
  0x59   :  { %832 = vmatprep.subr.bf16.mxu0 %v942_v21  ;;  %858 = vmatprep.subr.bf16.mxu1 %v1143_v55 }
  0x5b   :  { %361 = vperm.xlu1 %902, %v1227_v8   ;;  %381 = vperm.xlu0 %904, %v1227_v8  }
  0x5c   :  { %833 = vmatpush3.bf16.msra.mxu0 %v943_v22  ;;  %859 = vmatpush3.bf16.msra.mxu1 %v953_v11 }
  0x5d   :  { %834 = vmatprep.subr.bf16.mxu0 %v944_v23  ;;  %860 = vmatprep.subr.bf16.mxu1 %v1143_v55 }
  0x5f   :  { %905 = vset.pattern.permute.xlu1 %v1130_v19  ;;  %907 = vset.pattern.permute.xlu0 %v1131_v24  ;;  %v955_v19 = vld [vmem:[#allocation10] sm:$0xff]  }
  0x60   :  { %372 = vperm.xlu1 %905, %v1221_v3   ;;  %392 = vperm.xlu0 %907, %v1221_v3  }
  0x61   :  { %835 = vmatpush3.bf16.msra.mxu0 %v945_v25  ;;  %861 = vmatpush3.bf16.msra.mxu1 %v954_v15 }
  0x62   :  { %862 = vmatprep.subr.bf16.mxu1 %v1143_v55 }
  0x64   :  { %377 = vperm.xlu1 %905, %v1223_v6   ;;  %908 = vset.pattern.permute.xlu0 %v1132_v26 }
  0x65   :  { %409 = vperm.xlu0 %908, %v1217_v2   ;;  %276 = vmatmul.mubr.bf16.vlgmr.msra.gmra.mxu0 %v946_v27 }
  0x66   :  { %863 = vmatpush3.bf16.msra.mxu1 %v955_v19 }
  0x68   :  { %906 = vset.pattern.permute.xlu1 %v1131_v24 }
  0x69   :  { %389 = vperm.xlu1 %906, %v1217_v2   ;;  %421 = vperm.xlu0 %908, %v1227_v8  }
  0x6d   :  { %397 = vperm.xlu1 %906, %v1223_v6   ;;  %911 = vset.pattern.permute.xlu0 %v1133_v28 }
  0x6e   :  { %432 = vperm.xlu0 %911, %v1221_v3  }
  0x71   :  { %401 = vperm.xlu1 %906, %v1227_v8  }
  0x72   :  { %912 = vset.pattern.permute.xlu0 %v1134_v29 }
  0x73   :  { %449 = vperm.xlu0 %912, %v1217_v2  }
  0x75   :  { %909 = vset.pattern.permute.xlu1 %v1132_v26 }
  0x76   :  { %412 = vperm.xlu1 %909, %v1221_v3  }
  0x77   :  { %461 = vperm.xlu0 %912, %v1227_v8  }
  0x7a   :  { %417 = vperm.xlu1 %909, %v1223_v6  }
  0x7b   :  { %915 = vset.pattern.permute.xlu0 %v1135_v30 }
  0x7c   :  { %472 = vperm.xlu0 %915, %v1221_v3  }
  0x7e   :  { %910 = vset.pattern.permute.xlu1 %v1133_v28 }
  0x7f   :  { %429 = vperm.xlu1 %910, %v1217_v2  }
  0x80   :  { %916 = vset.pattern.permute.xlu0 %v1136_v31 }
  0x81   :  { %489 = vperm.xlu0 %916, %v1217_v2  }
  0x83   :  { %437 = vperm.xlu1 %910, %v1223_v6  }
  0x85   :  { %501 = vperm.xlu0 %916, %v1227_v8  }
  0x87   :  { %441 = vperm.xlu1 %910, %v1227_v8  }
  0x89   :  { %919 = vset.pattern.permute.xlu0 %v1137_v32 }
  0x8a   :  { %512 = vperm.xlu0 %919, %v1221_v3  }
  0x8b   :  { %913 = vset.pattern.permute.xlu1 %v1134_v29 }
  0x8c   :  { %452 = vperm.xlu1 %913, %v1221_v3  }
  0x8e   :  { %920 = vset.pattern.permute.xlu0 %v1138_v33 }
  0x8f   :  { %529 = vperm.xlu0 %920, %v1217_v2  }
  0x90   :  { %457 = vperm.xlu1 %913, %v1223_v6  }
  0x93   :  { %541 = vperm.xlu0 %920, %v1227_v8  }
  0x94   :  { %914 = vset.pattern.permute.xlu1 %v1135_v30 }
  0x95   :  { %469 = vperm.xlu1 %914, %v1217_v2  }
  0x97   :  { %923 = vset.pattern.permute.xlu0 %v1139_v34 }
  0x98   :  { %552 = vperm.xlu0 %923, %v1221_v3  }
  0x99   :  { %477 = vperm.xlu1 %914, %v1223_v6  }
  0x9c   :  { %924 = vset.pattern.permute.xlu0 %v1140_v35 }
  0x9d   :  { %481 = vperm.xlu1 %914, %v1227_v8   ;;  %569 = vperm.xlu0 %924, %v1217_v2  }
  0xa1   :  { %917 = vset.pattern.permute.xlu1 %v1136_v31  ;;  %581 = vperm.xlu0 %924, %v1227_v8  }
  0xa2   :  { %492 = vperm.xlu1 %917, %v1221_v3  }
  0xa5   :  { %927 = vset.pattern.permute.xlu0 %v1141_v36 }
  0xa6   :  { %497 = vperm.xlu1 %917, %v1223_v6   ;;  %592 = vperm.xlu0 %927, %v1221_v3  }
  0xaa   :  { %918 = vset.pattern.permute.xlu1 %v1137_v32  ;;  %928 = vset.pattern.permute.xlu0 %v1142_v37 }
  0xab   :  { %509 = vperm.xlu1 %918, %v1217_v2   ;;  %609 = vperm.xlu0 %928, %v1217_v2  }
  0xaf   :  { %517 = vperm.xlu1 %918, %v1223_v6   ;;  %621 = vperm.xlu0 %928, %v1227_v8  }
  0xb3   :  { %521 = vperm.xlu1 %918, %v1227_v8  }
  0xb7   :  { %921 = vset.pattern.permute.xlu1 %v1138_v33 }
  0xb8   :  { %532 = vperm.xlu1 %921, %v1221_v3  }
  0xbb   :  { %v330_v38 = vpop.permute.xlu1 %329  ;;  %v308_v39 = vpop.permute.xlu0 %307 }
  0xbc   :  { %537 = vperm.xlu1 %921, %v1223_v6   ;;  %vm312_vm0 = vcmp.eq.s32.totalorder %v308_v39, %v1281_v43  ;;  %vm334_vm2 = vcmp.eq.s32.totalorder %v330_v38, %v1281_v43 }
  0xbf   :  { %v333_v41 = vpop.permute.xlu1 %332  ;;  %v311_v42 = vpop.permute.xlu0 %310 }
  0xc0   :  { %922 = vset.pattern.permute.xlu1 %v1139_v34  ;;  %vm313_vm1 = vcmp.eq.s32.totalorder %v311_v42, %v1281_v43  ;;  %vm335_vm3 = vcmp.eq.s32.totalorder %v333_v41, %v1281_v43 }
  0xc1   :  { %549 = vperm.xlu1 %922, %v1217_v2  }
  0xc3   :  { %v317_v44 = vpop.permute.xlu0 %316 }
  0xc4   :  { %v322_v45 = vpop.permute.xlu1 %321  ;;  %v324_v46 = vsel %vm312_vm0, %v317_v44, 0.0 }
  0xc5   :  { %557 = vperm.xlu1 %922, %v1223_v6   ;;  %v325_v50 = vsel %vm313_vm1, %v322_v45, 0.0 }
  0xc8   :  { %v338_v47 = vpop.permute.xlu0 %337 }
  0xc9   :  { %v344_v48 = vsel %vm334_vm2, %v338_v47, 0.0  ;;  %561 = vperm.xlu1 %922, %v1227_v8   ;;  %v342_v49 = vpop.permute.xlu1 %341 }
  0xca   :  { %v346_v51 = vadd.f32 %v344_v48, %v324_v46  ;;  %v345_v52 = vsel %vm335_vm3, %v342_v49, 0.0 }
  0xcb   :  { %v347_v53 = vadd.f32 %v345_v52, %v325_v50 }
  0xcd   :  { %925 = vset.pattern.permute.xlu1 %v1140_v35  ;;  %v353_v58 = vpop.permute.xlu0 %352 }
  0xce   :  { %572 = vperm.xlu1 %925, %v1221_v3   ;;  %v350_v57 = vpop.permute.xlu1 %349  ;;  %vm355_vm6 = vcmp.eq.s32.totalorder %v353_v58, %v1281_v43 }
  0xcf   :  { %vm354_vm5 = vcmp.eq.s32.totalorder %v350_v57, %v1281_v43 }
  0xd2   :  { %577 = vperm.xlu1 %925, %v1223_v6   ;;  %v358_v60 = vpop.permute.xlu1 %357  ;;  %v370_v0 = vpop.permute.xlu0 %369 }
  0xd3   :  { %v364_v61 = vsel %vm354_vm5, %v358_v60, 0.0  ;;  %vm374_vm8 = vcmp.eq.s32.totalorder %v370_v0, %v1281_v43 }
  0xd4   :  { %v366_v63 = vadd.f32 %v364_v61, %v346_v51 }
  0xd6   :  { %926 = vset.pattern.permute.xlu1 %v1141_v36  ;;  %v362_v1 = vpop.permute.xlu1 %361  ;;  %v382_v9 = vpop.permute.xlu0 %381 }
  0xd7   :  { %v365_v4 = vsel %vm355_vm6, %v362_v1, 0.0  ;;  %589 = vperm.xlu1 %926, %v1217_v2  }
  0xd8   :  { %v367_v5 = vadd.f32 %v365_v4, %v347_v53 }
  0xdb   :  { %597 = vperm.xlu1 %926, %v1223_v6   ;;  %v373_v10 = vpop.permute.xlu1 %372  ;;  %v393_v18 = vpop.permute.xlu0 %392 }
  0xdc   :  { %vm375_vm7 = vcmp.eq.s32.totalorder %v373_v10, %v1281_v43  ;;  %vm395_vm11 = vcmp.eq.s32.totalorder %v393_v18, %v1281_v43 }
  0xdd   :  { %v385_v12 = vsel %vm375_vm7, %v382_v9, 0.0 }
  0xde   :  { %v387_v13 = vadd.f32 %v385_v12, %v367_v5 }
  0xdf   :  { %601 = vperm.xlu1 %926, %v1227_v8   ;;  %v378_v2 = vpop.permute.xlu1 %377 }
  0xe0   :  { %v384_v14 = vsel %vm374_vm8, %v378_v2, 0.0  ;;  %v410_v22 = vpop.permute.xlu0 %409 }
  0xe1   :  { %v386_v16 = vadd.f32 %v384_v14, %v366_v63  ;;  %vm414_vm13 = vcmp.eq.s32.totalorder %v410_v22, %v1281_v43 }
  0xe3   :  { %929 = vset.pattern.permute.xlu1 %v1142_v37 }
  0xe4   :  { %612 = vperm.xlu1 %929, %v1221_v3   ;;  %v390_v17 = vpop.permute.xlu1 %389  ;;  %v422_v3 = vpop.permute.xlu0 %421 }
  0xe5   :  { %vm394_vm9 = vcmp.eq.s32.totalorder %v390_v17, %v1281_v43 }
  0xe8   :  { %617 = vperm.xlu1 %929, %v1223_v6   ;;  %v398_v8 = vpop.permute.xlu1 %397 }
  0xe9   :  { %v404_v20 = vsel %vm394_vm9, %v398_v8, 0.0  ;;  %v433_v32 = vpop.permute.xlu0 %432 }
  0xea   :  { %v406_v21 = vadd.f32 %v404_v20, %v386_v16  ;;  %vm435_vm15 = vcmp.eq.s32.totalorder %v433_v32, %v1281_v43 }
  0xec   :  { %v402_v23 = vpop.permute.xlu1 %401 }
  0xed   :  { %v405_v24 = vsel %vm395_vm11, %v402_v23, 0.0 }
  0xee   :  { %v407_v25 = vadd.f32 %v405_v24, %v387_v13  ;;  %v450_v36 = vpop.permute.xlu0 %449 }
  0xef   :  { %vm454_vm1 = vcmp.eq.s32.totalorder %v450_v36, %v1281_v43 }
  0xf1   :  { %v413_v26 = vpop.permute.xlu1 %412 }
  0xf2   :  { %vm415_vm12 = vcmp.eq.s32.totalorder %v413_v26, %v1281_v43  ;;  %v462_v40 = vpop.permute.xlu0 %461 }
  0xf3   :  { %v425_v27 = vsel %vm415_vm12, %v422_v3, 0.0 }
  0xf4   :  { %v427_v28 = vadd.f32 %v425_v27, %v407_v25 }
  0xf5   :  { %v418_v6 = vpop.permute.xlu1 %417 }
  0xf6   :  { %v424_v29 = vsel %vm414_vm13, %v418_v6, 0.0 }
  0xf7   :  { %v426_v30 = vadd.f32 %v424_v29, %v406_v21  ;;  %v473_v53 = vpop.permute.xlu0 %472 }
  0xf8   :  { %vm475_vm2 = vcmp.eq.s32.totalorder %v473_v53, %v1281_v43 }
  0xfa   :  { %v430_v31 = vpop.permute.xlu1 %429 }
  0xfb   :  { %vm434_vm14 = vcmp.eq.s32.totalorder %v430_v31, %v1281_v43 }
  0xfc   :  { %v490_v55 = vpop.permute.xlu0 %489 }
  0xfd   :  { %vm494_vm6 = vcmp.eq.s32.totalorder %v490_v55, %v1281_v43 }
  0xfe   :  { %v438_v33 = vpop.permute.xlu1 %437 }
  0xff   :  { %v444_v34 = vsel %vm434_vm14, %v438_v33, 0.0 }
 0x100   :  { %v446_v35 = vadd.f32 %v444_v34, %v426_v30  ;;  %v502_v57 = vpop.permute.xlu0 %501 }
 0x102   :  { %v442_v37 = vpop.permute.xlu1 %441 }
 0x103   :  { %v445_v38 = vsel %vm435_vm15, %v442_v37, 0.0 }
 0x104   :  { %v447_v39 = vadd.f32 %v445_v38, %v427_v28 }
 0x105   :  { %v513_v59 = vpop.permute.xlu0 %512 }
 0x106   :  { %vm515_vm4 = vcmp.eq.s32.totalorder %v513_v59, %v1281_v43 }
 0x107   :  { %v453_v41 = vpop.permute.xlu1 %452 }
 0x108   :  { %vm455_vm0 = vcmp.eq.s32.totalorder %v453_v41, %v1281_v43 }
 0x109   :  { %v465_v42 = vsel %vm455_vm0, %v462_v40, 0.0 }
 0x10a   :  { %v467_v44 = vadd.f32 %v465_v42, %v447_v39  ;;  %v530_v62 = vpop.permute.xlu0 %529 }
 0x10b   :  { %v458_v45 = vpop.permute.xlu1 %457  ;;  %vm534_vm10 = vcmp.eq.s32.totalorder %v530_v62, %v1281_v43 }
 0x10c   :  { %v464_v46 = vsel %vm454_vm1, %v458_v45, 0.0  ;;  %vm733_vm1 = vcmask 814080  }
 0x10d   :  { %v466_v47 = vadd.f32 %v464_v46, %v446_v35  ;;  %v793_v35 = vld [vmem:[%s1344_s2] ss:$0 sm:$0xff]  ;;  %s1145_s2 = smov [#allocation11]  }
 0x10e   :  { %v542_v0 = vpop.permute.xlu0 %541  ;;  %s763_s27 = sshll.u32 %s1145_s2, 4  ;;  %s764_s27 = int_to_ptr.vmem [resolvable:$true] %s763_s27 }
 0x10f   :  { %s1068_s28 = scalar_lea.vmem %s764_s27, 256  ;;  %p1073_p12 = scmp.lt.s32.totalorder %s764_s27, %s764_s27 }
 0x110   :  { %v470_v48 = vpop.permute.xlu1 %469  ;;  %p1069_p11 = scmp.ne.s32.totalorder %s764_s27, %s1068_s28  ;;  %p1074_p13 = scmp.lt.s32.totalorder %s1068_s28, %s1068_s28 }
 0x111   :  { %vm474_vm5 = vcmp.eq.s32.totalorder %v470_v48, %v1281_v43 }
 0x112   :  { %p1075_p0 = por %p1074_p13, %p1073_p12 }
 0x113   :  { %v553_v4 = vpop.permute.xlu0 %552 }
 0x114   :  { %v478_v49 = vpop.permute.xlu1 %477  ;;  %vm555_vm8 = vcmp.eq.s32.totalorder %v553_v4, %v1281_v43  ;;  %p1076_p1 = pnand %p1075_p0, %p1069_p11 }
 0x115   :  { %v484_v18 = vsel %vm474_vm5, %v478_v49, 0.0 }
 0x116   :  { %v486_v23 = vadd.f32 %v484_v18, %v466_v47 }
 0x118   :  { %v482_v50 = vpop.permute.xlu1 %481  ;;  %v570_v7 = vpop.permute.xlu0 %569 }
 0x119   :  { %v485_v2 = vsel %vm475_vm2, %v482_v50, 0.0  ;;  %vm574_vm14 = vcmp.eq.s32.totalorder %v570_v7, %v1281_v43 }
 0x11a   :  { %v487_v19 = vadd.f32 %v485_v2, %v467_v44 }
 0x11c   :  { %v582_v12 = vpop.permute.xlu0 %581 }
 0x11d   :  { %v493_v51 = vpop.permute.xlu1 %492 }
 0x11e   :  { %vm495_vm3 = vcmp.eq.s32.totalorder %v493_v51, %v1281_v43 }
 0x11f   :  { %v505_v16 = vsel %vm495_vm3, %v502_v57, 0.0  ;;  %vm288_vm3 = vcmask 1043456  }
 0x120   :  { %v507_v20 = vadd.f32 %v505_v16, %v487_v19 }
 0x121   :  { %v498_v52 = vpop.permute.xlu1 %497  ;;  %v593_v15 = vpop.permute.xlu0 %592 }
 0x122   :  { %v504_v21 = vsel %vm494_vm6, %v498_v52, 0.0  ;;  %vm595_vm12 = vcmp.eq.s32.totalorder %v593_v15, %v1281_v43 }
 0x123   :  { %v506_v28 = vadd.f32 %v504_v21, %v486_v23 }
 0x125   :  { %v836_v10 = vpop.f32.mrf.mxu0 }
 0x126   :  { %v510_v54 = vpop.permute.xlu1 %509  ;;  %v610_v27 = vpop.permute.xlu0 %609 }
 0x127   :  { %v837_v13 = vpop.f32.mrf.mxu0  ;;  %vm514_vm9 = vcmp.eq.s32.totalorder %v510_v54, %v1281_v43  ;;  %vm614_vm2 = vcmp.eq.s32.totalorder %v610_v27, %v1281_v43 }
 0x128   :  { %v838_v49 = vadd.f32 %v837_v13, %v836_v10 }
 0x129   :  { %v839_v17 = vpop.f32.mrf.mxu0 }
 0x12a   :  { %v518_v56 = vpop.permute.xlu1 %517  ;;  %v622_v42 = vpop.permute.xlu0 %621 }
 0x12b   :  { %v840_v25 = vpop.f32.mrf.mxu0  ;;  %v524_v3 = vsel %vm514_vm9, %v518_v56, 0.0 }
 0x12c   :  { %v841_v32 = vadd.f32 %v840_v25, %v839_v17  ;;  %v526_v33 = vadd.f32 %v524_v3, %v506_v28 }
 0x12e   :  { %v522_v58 = vpop.permute.xlu1 %521  ;;  %v281_v44 = vadd.f32 %v841_v32, %v793_v35 }
 0x12f   :  { %v525_v8 = vsel %vm515_vm4, %v522_v58, 0.0  ;;  %vm681_vm4 = vcmask 818176   ;;  %v278_v58 = vadd.f32 %v838_v49, %v793_v35 }
 0x130   :  { %v527_v26 = vadd.f32 %v525_v8, %v507_v20  ;;  %v285_v53 = vmul.f32 %v281_v44, %v281_v44 }
 0x133   :  { %v533_v60 = vpop.permute.xlu1 %532 }
 0x134   :  { %vm535_vm7 = vcmp.eq.s32.totalorder %v533_v60, %v1281_v43  ;;  %v289_v60 = vsel %vm288_vm3, %v285_v53, 0.0 }
 0x135   :  { %v545_v24 = vsel %vm535_vm7, %v542_v0, 0.0 }
 0x136   :  { %v547_v29 = vadd.f32 %v545_v24, %v527_v26 }
 0x137   :  { %v538_v61 = vpop.permute.xlu1 %537 }
 0x138   :  { %v544_v30 = vsel %vm534_vm10, %v538_v61, 0.0 }
 0x139   :  { %v546_v38 = vadd.f32 %v544_v30, %v526_v33 }
 0x13c   :  { %v550_v63 = vpop.permute.xlu1 %549 }
 0x13d   :  { %vm554_vm13 = vcmp.eq.s32.totalorder %v550_v63, %v1281_v43  ;;  %v284_v63 = vmul.f32 %v278_v58, %v278_v58 }
 0x140   :  { %v558_v1 = vpop.permute.xlu1 %557 }
 0x141   :  { %v564_v36 = vsel %vm554_vm13, %v558_v1, 0.0 }
 0x142   :  { %v566_v45 = vadd.f32 %v564_v36, %v546_v38 }
 0x144   :  { %v562_v5 = vpop.permute.xlu1 %561 }
 0x145   :  { %v565_v6 = vsel %vm555_vm8, %v562_v5, 0.0 }
 0x146   :  { %v567_v37 = vadd.f32 %v565_v6, %v547_v29 }
 0x149   :  { %v573_v9 = vpop.permute.xlu1 %572 }
 0x14a   :  { %vm575_vm11 = vcmp.eq.s32.totalorder %v573_v9, %v1281_v43 }
 0x14b   :  { %v585_v34 = vsel %vm575_vm11, %v582_v12, 0.0 }
 0x14c   :  { %v587_v40 = vadd.f32 %v585_v34, %v567_v37 }
 0x14d   :  { %v578_v11 = vpop.permute.xlu1 %577 }
 0x14e   :  { %v584_v41 = vsel %vm574_vm14, %v578_v11, 0.0 }
 0x14f   :  { %v586_v50 = vadd.f32 %v584_v41, %v566_v45 }
 0x152   :  { %v590_v14 = vpop.permute.xlu1 %589 }
 0x153   :  { %vm594_vm15 = vcmp.eq.s32.totalorder %v590_v14, %v1281_v43 }
 0x156   :  { %v598_v22 = vpop.permute.xlu1 %597 }
 0x157   :  { %v604_v47 = vsel %vm594_vm15, %v598_v22, 0.0 }
 0x158   :  { %v606_v54 = vadd.f32 %v604_v47, %v586_v50 }
 0x15a   :  { %v602_v31 = vpop.permute.xlu1 %601 }
 0x15b   :  { %v605_v39 = vsel %vm595_vm12, %v602_v31, 0.0 }
 0x15c   :  { %v607_v48 = vadd.f32 %v605_v39, %v587_v40 }
 0x15f   :  { %v613_v46 = vpop.permute.xlu1 %612 }
 0x160   :  { %vm615_vm0 = vcmp.eq.s32.totalorder %v613_v46, %v1281_v43 }
 0x161   :  { %v625_v51 = vsel %vm615_vm0, %v622_v42, 0.0 }
 0x162   :  { %v627_v52 = vadd.f32 %v625_v51, %v607_v48 }
 0x163   :  { %v618_v55 = vpop.permute.xlu1 %617 }
 0x164   :  { %v624_v56 = vsel %vm614_vm2, %v618_v55, 0.0  ;;  %v734_v57 = vsel %vm733_vm1, %v627_v52, 0.0 }
 0x165   :  { %v626_v59 = vadd.f32 %v624_v56, %v606_v54  ;;  %735 = vadd.xlane.f32.xlu1 %v734_v57 }
 0x167   :  { %v628_v61 = vpack.c.bf16 %v627_v52, %v626_v59  ;;  %v730_v62 = vsel %vm681_vm4, %v626_v59, 0.0 }
 0x168   :  { %731 = vadd.xlane.f32.xlu0 %v730_v62 }
 0x169   :  { %865 = vmatmul.mubr.msk.bf16.vlgmr.msra.gmra.mxu1 %vm681_vm4, %v628_v61  ;;  %290 = vadd.xlane.f32.xlu1 %v289_v60 }
 0x16c   :  { %286 = vadd.xlane.f32.xlu0 %v284_v63 }
 0x1ee   :  { %v736_v0 = vpop.xlane.xlu1 %735 }
 0x1ef   :  { %v738_v2 = vmax.f32 %v736_v0, 1e-09 }
 0x1f1   :  { %v732_v1 = vpop.xlane.xlu0 %731 }
 0x1f2   :  { %v291_v43 = vpop.xlane.xlu1 %290  ;;  %v737_v13 = vmax.f32 %v732_v1, 1e-09 }
 0x1f3   :  { %v293_v4 = vmax.f32 %v291_v43, 1e-24 }
 0x1f5   :  { %956 = vrsqrt.f32 %v293_v4  ;;  %v287_v5 = vpop.xlane.xlu0 %286 }
 0x1f6   :  { %v292_v7 = vmax.f32 %v287_v5, 1e-24 }
 0x1f8   :  { %958 = vrsqrt.f32 %v292_v7 }
 0x1f9   :  { %960 = vrcp.f32 %v737_v13 }
 0x1fa   :  { %962 = vrcp.f32 %v738_v2 }
 0x202   :  { %v957_v9 = vpop.eup %956 }
 0x203   :  { %v297_v10 = vmul.f32 %v957_v9, %v281_v44 }
 0x205   :  { %v959_v11 = vpop.eup %958  ;;  %299 = vst [vmem:[#allocation11 + $0x8] sm:$0xf] %v297_v10 }
 0x206   :  { %v296_v12 = vmul.f32 %v959_v11, %v278_v58  ;;  %v961_v14 = vpop.eup %960 }
 0x207   :  { %v963_v19 = vpop.eup %962 }
 0x208   :  { %298 = vst [vmem:[#allocation11] sm:$0xff] %v296_v12 }
 0x229   :  { %v723_v15 = vpop.f32.mrf.mxu1 }
 0x22a   :  { %v741_v16 = vmul.f32 %v961_v14, %v723_v15 }
 0x22b   :  { %v866_v17 = vpop.f32.mrf.mxu1 }
 0x22c   :  { %v743_v18 = vmul.f32 %v741_v16, %v741_v16 }
 0x22d   :  { %v726_v8 = vpop.f32.mrf.mxu1 }
 0x22e   :  { %v742_v20 = vmul.f32 %v963_v19, %v726_v8  ;;  %745 = vadd.xlane.f32.xlu0 %v743_v18 }
 0x22f   :  { %v867_v21 = vpop.f32.mrf.mxu1 }
 0x230   :  { %v744_v22 = vmul.f32 %v742_v20, %v742_v20 }
 0x232   :  { %v747_v23 = vsel %vm288_vm3, %v744_v22, 0.0 }
 0x233   :  { %748 = vadd.xlane.f32.xlu1 %v747_v23 }
 0x234   :  { %1079 = shalt.err (!%p1076_p1)
}
 0x235   :  { %769 = dma.vmem_to_hbm [thread:$0]  %s764_s27, 256, %s1348_s6, [#allocation4], %s1123_s13, %s1123_s13, %s1124_s14  }
 0x236   :  { %s1146_s8 = smov [#allocation12]  }
 0x237   :  { %s775_s9 = sshll.u32 %s1146_s8, 4  ;;  %s776_s9 = int_to_ptr.vmem [resolvable:$true] %s775_s9 }
 0x238   :  { %s1088_s10 = scalar_lea.vmem %s776_s9, 256  ;;  %p1093_p3 = scmp.lt.s32.totalorder %s776_s9, %s776_s9 }
 0x239   :  { %p1089_p2 = scmp.ne.s32.totalorder %s776_s9, %s1088_s10  ;;  %p1094_p4 = scmp.lt.s32.totalorder %s1088_s10, %s1088_s10 }
 0x23b   :  { %p1095_p5 = por %p1094_p4, %p1093_p3 }
 0x23d   :  { %p1096_p6 = pnand %p1095_p5, %p1089_p2 }
 0x2b7   :  { %v746_v24 = vpop.xlane.xlu0 %745 }
 0x2b8   :  { %v750_v25 = vmax.f32 %v746_v24, 1e-24 }
 0x2ba   :  { %964 = vrsqrt.f32 %v750_v25 }
 0x2bc   :  { %v749_v3 = vpop.xlane.xlu1 %748 }
 0x2bd   :  { %v751_v26 = vmax.f32 %v749_v3, 1e-24 }
 0x2bf   :  { %966 = vrsqrt.f32 %v751_v26 }
 0x2c7   :  { %v965_v27 = vpop.eup %964 }
 0x2c8   :  { %v754_v28 = vmul.f32 %v965_v27, %v741_v16 }
 0x2ca   :  { %756 = vst [vmem:[#allocation12] sm:$0xff] %v754_v28 }
 0x2cc   :  { %v967_v6 = vpop.eup %966 }
 0x2cd   :  { %v755_v29 = vmul.f32 %v967_v6, %v742_v20 }
 0x2cf   :  { %757 = vst [vmem:[#allocation12 + $0x8] sm:$0xf] %v755_v29 }
 0x2d0   :  { %1099 = shalt.err (!%p1096_p6)
}
 0x2d1   :  { %781 = dma.vmem_to_hbm [thread:$0]  %s776_s9, 256, %s1349_s7, [#allocation13], %s1123_s13, %s1123_s13, %s1124_s14  }
 0x2d2   :  { %1114 = dma.done.wait [#allocation4], 256  }
 0x2d3   :  { %1115 = vsyncadd [#allocation4], 4294967040 }
 0x2d4   :  { %1116 = dma.done.wait [#allocation13], 256  }
 0x2d5   :  { %1117 = vsyncadd [#allocation13], 4294967040 }
 0x2d6   :  { %788 = vsyncpa [#allocation3], 1 }
 0x2d7   :  { %789 = vsyncpa [#allocation6], 1 }
 0x2d8   :  { %790 = vsyncpa [#allocation9], 1 }
 0x2d9   :  { %791 = vsyncpa [#allocation4], 1 }
 0x2da   :  { %792 = vsyncpa [#allocation13], 1 }

</bundles_post_ra>
